<compile_context>
chip_gen: v7x
topology: tpu7x:2x2x1
jax: 0.10.0
libtpu: 0.0.40
codegen_flags: <defaults>
</compile_context>

<pallas_src>
import jax
import jax.numpy as jnp
from jax.experimental import pallas as pl
from jax.experimental.pallas import tpu as pltpu


def mlp_kernel(xT_ref, w1_ref, b1_ref, w2_ref, b2_ref, w3_ref, b3_ref, o_ref):
    # xT: [d_in, B_tile]   w1: [H, d_in]  b1: [H, 1]
    # w2: [H, H]           b2: [H, 1]
    # w3: [O, H]           b3: [O, 1]     o: [O, B_tile]
    d_in = xT_ref.shape[0]
    xT = xT_ref[...]

    if d_in <= 8:
        # K is tiny: do layer 1 as K broadcast-FMAs on the VPU (f32), keeping
        # the MXU push budget for the HxH layer.
        w1 = w1_ref[...].astype(jnp.float32)
        x32 = xT.astype(jnp.float32)
        h1 = w1[:, 0:1] * x32[0:1, :]
        for k in range(1, d_in):
            h1 = h1 + w1[:, k : k + 1] * x32[k : k + 1, :]
    else:
        h1 = jnp.dot(w1_ref[...], xT, preferred_element_type=jnp.float32)
    h1 = jnp.tanh(h1 + b1_ref[...])                        # [H, B_tile], f32

    h2 = jnp.dot(w2_ref[...], h1.astype(w2_ref.dtype),
                 preferred_element_type=jnp.float32)
    h2 = jnp.tanh(h2 + b2_ref[...])                        # [H, B_tile], f32

    out = jnp.dot(w3_ref[...], h2.astype(w3_ref.dtype),
                  preferred_element_type=jnp.float32)
    o_ref[...] = (out + b3_ref[...]).astype(o_ref.dtype)   # [O, B_tile]


def _round_up(n, m):
    return ((n + m - 1) // m) * m


def mlp_forward(x, params, *, batch_tile=4096, compute_dtype=jnp.bfloat16,
                x_is_transposed=False):
    """Forward pass of the 3-layer tanh MLP.

    x: [B, d_in] float32 (or [d_in, B] if x_is_transposed=True).
    params: torch-convention weights W:[out, in], b:[out].
    compute_dtype: dtype fed to the MXU for x and weight matrices (bf16 default
      on all chip generations); biases, tanh and accumulation stay float32.
    """
    if x_is_transposed:
        d_in, B = x.shape
        xT = x.astype(compute_dtype)
    else:
        B, d_in = x.shape
        xT = x.T.astype(compute_dtype)

    H = params["w1"].shape[0]           # torch weight shape is (out, in)
    out_dim = params["w3"].shape[0]     # = 1 for this module

    # --- batch tiling: 128-multiple tiles, big enough to amortize grid-step
    # overhead, but >=2 grid steps for mid-size B (feeds both v7x TCs).
    batch_tile = _round_up(max(int(batch_tile), 128), 128)
    b_tile = min(batch_tile, max(128, _round_up((B + 1) // 2, 128)))
    b_pad = _round_up(B, b_tile)
    if b_pad > B:
        xT = jnp.pad(xT, ((0, 0), (0, b_pad - B)))

    # --- weights/biases (no feature padding; blocks use full array extents)
    w1 = params["w1"].astype(compute_dtype)                   # [H, d_in]
    w2 = params["w2"].astype(compute_dtype)                   # [H, H]
    w3 = params["w3"].astype(compute_dtype)                   # [O, H]
    b1 = params["b1"].reshape(H, 1).astype(jnp.float32)
    b2 = params["b2"].reshape(H, 1).astype(jnp.float32)
    b3 = params["b3"].reshape(out_dim, 1).astype(jnp.float32)

    grid = (b_pad // b_tile,)

    def resident(shape):
        return pl.BlockSpec(shape, lambda i: (0, 0))

    itemsize = jnp.dtype(compute_dtype).itemsize
    cost = pl.CostEstimate(
        flops=2 * b_pad * (d_in * H + H * H + H * out_dim),
        transcendentals=2 * b_pad * H,
        bytes_accessed=(b_pad * d_in * itemsize            # x
                        + b_pad * out_dim * 4               # output
                        + (w1.size + w2.size + w3.size) * itemsize
                        + (b1.size + b2.size + b3.size) * 4),
    )

    outT = pl.pallas_call(
        mlp_kernel,
        out_shape=jax.ShapeDtypeStruct((out_dim, b_pad), jnp.float32),
        grid=grid,
        in_specs=[
            pl.BlockSpec((d_in, b_tile), lambda i: (0, i)),   # x tile, pipelined
            resident((H, d_in)),                              # w1 (VMEM-resident)
            resident((H, 1)),                                 # b1
            resident((H, H)),                                 # w2
            resident((H, 1)),                                 # b2
            resident((out_dim, H)),                           # w3
            resident((out_dim, 1)),                           # b3
        ],
        out_specs=pl.BlockSpec((out_dim, b_tile), lambda i: (0, i)),
        compiler_params=pltpu.CompilerParams(
            dimension_semantics=("parallel",),                # megacore on v7x
            vmem_limit_bytes=48 * 1024 * 1024,                # v5e default is 16 MiB
        ),
        cost_estimate=cost,
    )(xT, w1, b1, w2, b2, w3, b3)

    return outT[:, :B].T                                      # [B, out_dim]


def init_params(key, input_dim, hidden_dim):
    """Deterministic init matching torch.nn.Linear shapes: W [out, in], b [out]."""
    ks = jax.random.split(key, 6)

    def uniform(k, shape, fan_in):
        bound = 1.0 / jnp.sqrt(fan_in)
        return jax.random.uniform(k, shape, jnp.float32, -bound, bound)

    return {
        "w1": uniform(ks[0], (hidden_dim, input_dim), input_dim),
        "b1": uniform(ks[1], (hidden_dim,), input_dim),
        "w2": uniform(ks[2], (hidden_dim, hidden_dim), hidden_dim),
        "b2": uniform(ks[3], (hidden_dim,), hidden_dim),
        "w3": uniform(ks[4], (1, hidden_dim), hidden_dim),
        "b3": uniform(ks[5], (1,), hidden_dim),
    }


def mlp_reference(x, p):
    h = jnp.tanh(x @ p["w1"].T + p["b1"])
    h = jnp.tanh(h @ p["w2"].T + p["b2"])
    return h @ p["w3"].T + p["b3"]


# TODO(synk): set_sub_network / reset_super_network are training-time
# architecture-surgery hooks with no forward-pass semantics; not translated.

if __name__ == "__main__":
    key = jax.random.PRNGKey(0)
    k_x, k_p, k_x2 = jax.random.split(key, 3)

    # Small deterministic shapes consistent with the module.
    B, input_dim, hidden_dim = 8, 4, 32
    x = jax.random.normal(k_x, (B, input_dim), jnp.float32)
    params = init_params(k_p, input_dim, hidden_dim)

    # f32 compute path: tight check against the pure-JAX reference.
    out = jax.block_until_ready(mlp_forward(x, params, compute_dtype=jnp.float32))
    ref = mlp_reference(x, params)
    assert out.shape == (B, 1), out.shape
    assert jnp.allclose(out, ref, atol=5e-3, rtol=5e-3), (out, ref)

    # Default bf16 path, non-multiple batch, multi-step grid (>=2 tiles).
    B2 = 700
    x2 = jax.random.normal(k_x2, (B2, input_dim), jnp.float32)
    out2 = jax.block_until_ready(mlp_forward(x2, params))
    ref2 = mlp_reference(x2, params)
    assert out2.shape == (B2, 1), out2.shape
    assert jnp.allclose(out2, ref2, atol=7e-2, rtol=7e-2)

    print("KERNEL_OK")
</pallas_src>

<mosaic_0001>
module attributes {stable_mosaic.version = 11 : i64} {
  func.func @mlp_kernel(%arg0: i32, %arg1: memref<4x128xf32, #tpu.memory_space<vmem>>, %arg2: memref<32x4xf32, #tpu.memory_space<vmem>>, %arg3: memref<32x1xf32, #tpu.memory_space<vmem>>, %arg4: memref<32x32xf32, #tpu.memory_space<vmem>>, %arg5: memref<32x1xf32, #tpu.memory_space<vmem>>, %arg6: memref<1x32xf32, #tpu.memory_space<vmem>>, %arg7: memref<1x1xf32, #tpu.memory_space<vmem>>, %arg8: memref<1x128xf32, #tpu.memory_space<vmem>>) attributes {dimension_semantics = [#tpu.dimension_semantics<parallel>], iteration_bounds = array<i64: 1>, scalar_prefetch = 0 : i64, scratch_operands = 0 : i64, tpu.core_type = #tpu.core_type<tc>, window_params = [{transform_indices = @transform_0, window_bounds = array<i64: 4, 128>}, {pipeline_mode = #tpu.pipeline_mode<synchronous>, transform_indices = @transform_1, window_bounds = array<i64: 32, 4>}, {pipeline_mode = #tpu.pipeline_mode<synchronous>, transform_indices = @transform_2, window_bounds = array<i64: 32, 1>}, {pipeline_mode = #tpu.pipeline_mode<synchronous>, transform_indices = @transform_3, window_bounds = array<i64: 32, 32>}, {pipeline_mode = #tpu.pipeline_mode<synchronous>, transform_indices = @transform_4, window_bounds = array<i64: 32, 1>}, {pipeline_mode = #tpu.pipeline_mode<synchronous>, transform_indices = @transform_5, window_bounds = array<i64: 1, 32>}, {pipeline_mode = #tpu.pipeline_mode<synchronous>, transform_indices = @transform_6, window_bounds = array<i64: 1, 1>}, {transform_indices = @transform_7, window_bounds = array<i64: 1, 128>}]} {
    %c0 = arith.constant 0 : index
    %c0_0 = arith.constant 0 : index
    %0 = vector.load %arg1[%c0, %c0_0] : memref<4x128xf32, #tpu.memory_space<vmem>>, vector<4x128xf32>
    %c0_1 = arith.constant 0 : index
    %c0_2 = arith.constant 0 : index
    %1 = vector.load %arg2[%c0_1, %c0_2] : memref<32x4xf32, #tpu.memory_space<vmem>>, vector<32x4xf32>
    %2 = vector.extract_strided_slice %1 {offsets = [0, 0], sizes = [32, 1], strides = [1, 1]} : vector<32x4xf32> to vector<32x1xf32>
    %3 = vector.extract_strided_slice %0 {offsets = [0, 0], sizes = [1, 128], strides = [1, 1]} : vector<4x128xf32> to vector<1x128xf32>
    %4 = vector.broadcast %2 : vector<32x1xf32> to vector<32x128xf32>
    %5 = vector.broadcast %3 : vector<1x128xf32> to vector<32x128xf32>
    %6 = arith.mulf %4, %5 : vector<32x128xf32>
    %7 = vector.extract_strided_slice %1 {offsets = [0, 1], sizes = [32, 1], strides = [1, 1]} : vector<32x4xf32> to vector<32x1xf32>
    %8 = vector.extract_strided_slice %0 {offsets = [1, 0], sizes = [1, 128], strides = [1, 1]} : vector<4x128xf32> to vector<1x128xf32>
    %9 = vector.broadcast %7 : vector<32x1xf32> to vector<32x128xf32>
    %10 = vector.broadcast %8 : vector<1x128xf32> to vector<32x128xf32>
    %11 = arith.mulf %9, %10 : vector<32x128xf32>
    %12 = arith.addf %6, %11 : vector<32x128xf32>
    %13 = vector.extract_strided_slice %1 {offsets = [0, 2], sizes = [32, 1], strides = [1, 1]} : vector<32x4xf32> to vector<32x1xf32>
    %14 = vector.extract_strided_slice %0 {offsets = [2, 0], sizes = [1, 128], strides = [1, 1]} : vector<4x128xf32> to vector<1x128xf32>
    %15 = vector.broadcast %13 : vector<32x1xf32> to vector<32x128xf32>
    %16 = vector.broadcast %14 : vector<1x128xf32> to vector<32x128xf32>
    %17 = arith.mulf %15, %16 : vector<32x128xf32>
    %18 = arith.addf %12, %17 : vector<32x128xf32>
    %19 = vector.extract_strided_slice %1 {offsets = [0, 3], sizes = [32, 1], strides = [1, 1]} : vector<32x4xf32> to vector<32x1xf32>
    %20 = vector.extract_strided_slice %0 {offsets = [3, 0], sizes = [1, 128], strides = [1, 1]} : vector<4x128xf32> to vector<1x128xf32>
    %21 = vector.broadcast %19 : vector<32x1xf32> to vector<32x128xf32>
    %22 = vector.broadcast %20 : vector<1x128xf32> to vector<32x128xf32>
    %23 = arith.mulf %21, %22 : vector<32x128xf32>
    %24 = arith.addf %18, %23 : vector<32x128xf32>
    %c0_3 = arith.constant 0 : index
    %c0_4 = arith.constant 0 : index
    %25 = vector.load %arg3[%c0_3, %c0_4] : memref<32x1xf32, #tpu.memory_space<vmem>>, vector<32x1xf32>
    %26 = vector.broadcast %25 : vector<32x1xf32> to vector<32x128xf32>
    %27 = arith.addf %24, %26 : vector<32x128xf32>
    %28 = math.tanh %27 : vector<32x128xf32>
    %c0_5 = arith.constant 0 : index
    %c0_6 = arith.constant 0 : index
    %29 = vector.load %arg4[%c0_5, %c0_6] : memref<32x32xf32, #tpu.memory_space<vmem>>, vector<32x32xf32>
    %cst = arith.constant dense<0.000000e+00> : vector<32x128xf32>
    %30 = tpu.matmul %29, %28, %cst {dimension_numbers = #tpu.dot_dimension_numbers<[1], [0], [0], [1], [0, 0, 1, 1], [], []>} : vector<32x32xf32>, vector<32x128xf32>, vector<32x128xf32> -> vector<32x128xf32>
    %c0_7 = arith.constant 0 : index
    %c0_8 = arith.constant 0 : index
    %31 = vector.load %arg5[%c0_7, %c0_8] : memref<32x1xf32, #tpu.memory_space<vmem>>, vector<32x1xf32>
    %32 = vector.broadcast %31 : vector<32x1xf32> to vector<32x128xf32>
    %33 = arith.addf %30, %32 : vector<32x128xf32>
    %34 = math.tanh %33 : vector<32x128xf32>
    %c0_9 = arith.constant 0 : index
    %c0_10 = arith.constant 0 : index
    %35 = vector.load %arg6[%c0_9, %c0_10] : memref<1x32xf32, #tpu.memory_space<vmem>>, vector<1x32xf32>
    %cst_11 = arith.constant dense<0.000000e+00> : vector<1x128xf32>
    %36 = tpu.matmul %35, %34, %cst_11 {dimension_numbers = #tpu.dot_dimension_numbers<[1], [0], [0], [1], [0, 0, 1, 1], [], []>} : vector<1x32xf32>, vector<32x128xf32>, vector<1x128xf32> -> vector<1x128xf32>
    %c0_12 = arith.constant 0 : index
    %c0_13 = arith.constant 0 : index
    %37 = vector.load %arg7[%c0_12, %c0_13] : memref<1x1xf32, #tpu.memory_space<vmem>>, vector<1x1xf32>
    %38 = vector.broadcast %37 : vector<1x1xf32> to vector<1x128xf32>
    %39 = arith.addf %36, %38 : vector<1x128xf32>
    %c0_14 = arith.constant 0 : index
    %c0_15 = arith.constant 0 : index
    %40 = vector.load %arg8[%c0_14, %c0_15] : memref<1x128xf32, #tpu.memory_space<vmem>>, vector<1x128xf32>
    tpu.vector_store %arg8[%c0_14, %c0_15], %39 {strides = array<i32>} : memref<1x128xf32, #tpu.memory_space<vmem>>, vector<1x128xf32>,
    return
  }
  func.func @transform_0(%arg0: i32) -> (i32, i32) {
    %c0_i32 = arith.constant 0 : i32
    %c0_i32_0 = arith.constant 0 : i32
    return %c0_i32, %arg0 : i32, i32
  }
  func.func @transform_1(%arg0: i32) -> (i32, i32) {
    %c0_i32 = arith.constant 0 : i32
    %c0_i32_0 = arith.constant 0 : i32
    %c0_i32_1 = arith.constant 0 : i32
    return %c0_i32, %c0_i32_0 : i32, i32
  }
  func.func @transform_2(%arg0: i32) -> (i32, i32) {
    %c0_i32 = arith.constant 0 : i32
    %c0_i32_0 = arith.constant 0 : i32
    %c0_i32_1 = arith.constant 0 : i32
    return %c0_i32, %c0_i32_0 : i32, i32
  }
  func.func @transform_3(%arg0: i32) -> (i32, i32) {
    %c0_i32 = arith.constant 0 : i32
    %c0_i32_0 = arith.constant 0 : i32
    %c0_i32_1 = arith.constant 0 : i32
    return %c0_i32, %c0_i32_0 : i32, i32
  }
  func.func @transform_4(%arg0: i32) -> (i32, i32) {
    %c0_i32 = arith.constant 0 : i32
    %c0_i32_0 = arith.constant 0 : i32
    %c0_i32_1 = arith.constant 0 : i32
    return %c0_i32, %c0_i32_0 : i32, i32
  }
  func.func @transform_5(%arg0: i32) -> (i32, i32) {
    %c0_i32 = arith.constant 0 : i32
    %c0_i32_0 = arith.constant 0 : i32
    %c0_i32_1 = arith.constant 0 : i32
    return %c0_i32, %c0_i32_0 : i32, i32
  }
  func.func @transform_6(%arg0: i32) -> (i32, i32) {
    %c0_i32 = arith.constant 0 : i32
    %c0_i32_0 = arith.constant 0 : i32
    %c0_i32_1 = arith.constant 0 : i32
    return %c0_i32, %c0_i32_0 : i32, i32
  }
  func.func @transform_7(%arg0: i32) -> (i32, i32) {
    %c0_i32 = arith.constant 0 : i32
    %c0_i32_0 = arith.constant 0 : i32
    return %c0_i32, %arg0 : i32, i32
  }
}

</mosaic_0001>

<bundles_post_ra>
// kernel: tpu_custom_call.1
= control target key start
LH: loop header
LB: loop body
LE: loop exit
PB: predicated region body
PF: predicated region fallthrough
CT: control target
= control target key end

     0   :  { %s655_s0 = inlined_call_operand.vmem [shape: f32[4,128], index: 0, kind: input, shape index: {}]   ;;  %s656_s1 = inlined_call_operand.vmem [shape: f32[32,4], index: 1, kind: input, shape index: {}]   ;;  %s657_s2 = inlined_call_operand.vmem [shape: f32[32,1], index: 2, kind: input, shape index: {}]   ;;  %s658_s3 = inlined_call_operand.vmem [shape: f32[32,32], index: 3, kind: input, shape index: {}]   ;;  %s659_s4 = inlined_call_operand.vmem [shape: f32[32,1], index: 4, kind: input, shape index: {}]   ;;  %s660_s5 = inlined_call_operand.vmem [shape: f32[1,32], index: 5, kind: input, shape index: {}]   ;;  %s661_s6 = inlined_call_operand.<no memory space> [shape: f32[1,1], index: 6, kind: input, shape index: {}]   ;;  %s662_s7 = inlined_call_operand.hbm [shape: f32[1,128], index: 7, kind: output, shape index: {}]  }
   0x1   :  { %v12_v0 = vstv %s661_s6 }
   0x2   :  { %13 = vst [vmem:[#allocation2] sm:$0x1] %v12_v0 }
   0x3   :  { %v30_v1 = vld [vmem:[%s656_s1] sm:$0xff]  ;;  %v523_v2 = vmov 3   ;;  %v524_v3 = vmov 1   ;;  %v31_v4 = vld [vmem:[%s656_s1 + $0x8] sm:$0xff] }
   0x4   :  { %476 = vset.pattern.permute.xlu0 %v523_v2  ;;  %472 = vset.pattern.permute.xlu1 %v524_v3 }
   0x5   :  { %119 = vperm.xlu0 %476, %v30_v1   ;;  %63 = vperm.xlu1 %472, %v30_v1  }
   0x6   :  { %14 = vsyncpa [#allocation4], 0  ;;  %v525_v5 = vmov 2   ;;  %v33_v6 = vld [vmem:[%s656_s1 + $0x18] sm:$0xff]  ;;  %v32_v7 = vld [vmem:[%s656_s1 + $0x10] sm:$0xff]  ;;  %v526_v8 = vmov 0   ;;  %v54_v26 = vlaneseq }
   0x7   :  { %v146_v9 = vld [vmem:[%s657_s2] sm:$0xff]  ;;  %v149_v10 = vld [vmem:[%s657_s2 + $0x18] sm:$0xff]  ;;  %v183_v11 = vld [vmem:[%s659_s4 + $0x8] sm:$0xff]  ;;  %vm206_vm0 = vcmask 261120   ;;  %vm528_vm1 = vmmov 0   ;;  %s530_s9 = smov [#allocation3]  }
   0x8   :  { %v185_v12 = vld [vmem:[%s659_s4 + $0x18] sm:$0xff]  ;;  %v147_v13 = vld [vmem:[%s657_s2 + $0x8] sm:$0xff]  ;;  %v148_v14 = vld [vmem:[%s657_s2 + $0x10] sm:$0xff]  ;;  %v614_v29 = vshrl.u32 %v54_v26, 7  ;;  %s399_s10 = sshll.u32 %s530_s9, 4  ;;  %s400_s10 = int_to_ptr.vmem [resolvable:$true] %s399_s10 }
   0x9   :  { %477 = vset.pattern.permute.xlu0 %v525_v5  ;;  %67 = vperm.xlu1 %472, %v31_v4   ;;  %v182_v15 = vld [vmem:[%s659_s4] sm:$0xff]  ;;  %v184_v16 = vld [vmem:[%s659_s4 + $0x10] sm:$0xff]  ;;  %v181_v26 = vld [vmem:[%s658_s3 + $0x18] sm:$0xff]  ;;  %s499_s11 = scalar_lea.vmem %s400_s10, 16  ;;  %s503_s12 = scalar_lea.vmem %s400_s10, 32 }
   0xa   :  { %91 = vperm.xlu0 %477, %v30_v1   ;;  %v309_v17 = vld [vmem:[#allocation2] sm:$0x1]  ;;  %v56_v30 = vsub.s32 0, %v614_v29  ;;  %v80_v32 = vsub.s32 1, %v614_v29  ;;  %v108_v38 = vsub.s32 2, %v614_v29  ;;  %v136_v39 = vsub.s32 3, %v614_v29  ;;  %p500_p0 = scmp.ne.s32.totalorder %s400_s10, %s499_s11  ;;  %p504_p1 = scmp.lt.s32.totalorder %s400_s10, %s400_s10 }
   0xb   :  { %v178_v18 = vld [vmem:[%s658_s3] sm:$0xff]  ;;  %p505_p2 = scmp.lt.s32.totalorder %s503_s12, %s499_s11 }
   0xc   :  { %433 = vmatprep.mubr.msk.f32.mxu0 %vm206_vm0, %v178_v18  ;;  %v29_v33 = vld [vmem:[%s655_s0] sm:$0xf] }
   0xd   :  { %473 = vset.pattern.permute.xlu1 %v525_v5  ;;  %v57_v35 = vrot.slane %v29_v33, %v56_v30  ;;  %v81_v37 = vrot.slane %v29_v33, %v80_v32  ;;  %v109_v43 = vrot.slane %v29_v33, %v108_v38  ;;  %v137_v45 = vrot.slane %v29_v33, %v136_v39  ;;  %p506_p3 = por %p505_p2, %p504_p1 }
   0xe   :  { %103 = vperm.xlu0 %477, %v33_v6   ;;  %95 = vperm.xlu1 %473, %v31_v4  }
   0xf   :  { %p507_p4 = pnand %p506_p3, %p500_p0 }
  0x12   :  { %480 = vset.pattern.permute.xlu0 %v526_v8  ;;  %474 = vset.pattern.permute.xlu1 %v526_v8 }
  0x13   :  { %36 = vperm.xlu0 %480, %v30_v1   ;;  %46 = vperm.xlu1 %474, %v32_v7  }
  0x17   :  { %41 = vperm.xlu0 %480, %v31_v4   ;;  %475 = vset.pattern.permute.xlu1 %v524_v3 }
  0x18   :  { %71 = vperm.xlu1 %475, %v32_v7  }
  0x1b   :  { %51 = vperm.xlu0 %480, %v33_v6  }
  0x1c   :  { %75 = vperm.xlu1 %475, %v33_v6  }
  0x1f   :  { %152 = vperm.xlu0 %480, %v146_v9  }
  0x20   :  { %478 = vset.pattern.permute.xlu1 %v523_v2 }
  0x21   :  { %123 = vperm.xlu1 %478, %v31_v4  }
  0x23   :  { %167 = vperm.xlu0 %480, %v149_v10  }
  0x25   :  { %479 = vset.pattern.permute.xlu1 %v525_v5 }
  0x26   :  { %99 = vperm.xlu1 %479, %v32_v7  }
  0x27   :  { %193 = vperm.xlu0 %480, %v183_v11  }
  0x2a   :  { %481 = vset.pattern.permute.xlu1 %v523_v2 }
  0x2b   :  { %203 = vperm.xlu0 %480, %v185_v12   ;;  %127 = vperm.xlu1 %481, %v32_v7  }
  0x2f   :  { %131 = vperm.xlu1 %481, %v33_v6  }
  0x33   :  { %482 = vset.pattern.permute.xlu1 %v526_v8 }
  0x34   :  { %157 = vperm.xlu1 %482, %v147_v13  }
  0x38   :  { %162 = vperm.xlu1 %482, %v148_v14  }
  0x3c   :  { %188 = vperm.xlu1 %482, %v182_v15  }
  0x40   :  { %198 = vperm.xlu1 %482, %v184_v16  }
  0x44   :  { %312 = vperm.xlu1 %482, %v309_v17  }
  0x84   :  { %v64_v19 = vpop.permute.xlu1 %63  ;;  %v120_v20 = vpop.permute.xlu0 %119 }
  0x85   :  { %v82_v42 = vmul.f32 %v81_v37, %v64_v19  ;;  %v138_v53 = vmul.f32 %v137_v45, %v120_v20 }
  0x88   :  { %v68_v21 = vpop.permute.xlu1 %67 }
  0x89   :  { %v92_v22 = vpop.permute.xlu0 %91  ;;  %v83_v51 = vmul.f32 %v81_v37, %v68_v21 }
  0x8a   :  { %v110_v46 = vmul.f32 %v109_v43, %v92_v22 }
  0x8d   :  { %v96_v23 = vpop.permute.xlu1 %95  ;;  %v104_v24 = vpop.permute.xlu0 %103 }
  0x8e   :  { %v113_v54 = vmul.f32 %v109_v43, %v104_v24  ;;  %v111_v58 = vmul.f32 %v109_v43, %v96_v23  ;;  %v179_v24 = vld [vmem:[%s658_s3 + $0x8] sm:$0xff] }
  0x92   :  { %v47_v25 = vpop.permute.xlu1 %46  ;;  %v37_v28 = vpop.permute.xlu0 %36 }
  0x93   :  { %v58_v40 = vmul.f32 %v57_v35, %v37_v28  ;;  %v60_v2 = vmul.f32 %v57_v35, %v47_v25  ;;  %v180_v25 = vld [vmem:[%s658_s3 + $0x10] sm:$0xff]  ;;  %v529_v28 = vmov 0.0  }
  0x94   :  { %447 = vmatprep.mubr.msk.f32.mxu1 %vm528_vm1, %v529_v28 }
  0x95   :  { %v86_v47 = vadd.f32 %v82_v42, %v58_v40 }
  0x96   :  { %v42_v34 = vpop.permute.xlu0 %41 }
  0x97   :  { %v72_v27 = vpop.permute.xlu1 %71  ;;  %v59_v50 = vmul.f32 %v57_v35, %v42_v34  ;;  %v114_v56 = vadd.f32 %v110_v46, %v86_v47 }
  0x98   :  { %v84_v59 = vmul.f32 %v81_v37, %v72_v27  ;;  %v527_v27 = vmov 0.0|0.0  }
  0x99   :  { %v87_v57 = vadd.f32 %v83_v51, %v59_v50  ;;  %v142_v63 = vadd.f32 %v138_v53, %v114_v56  ;;  %458 = vmatprep.subr.bf16.mxu1 %v527_v27 }
  0x9a   :  { %v52_v41 = vpop.permute.xlu0 %51  ;;  %v88_v7 = vadd.f32 %v84_v59, %v60_v2 }
  0x9b   :  { %v76_v31 = vpop.permute.xlu1 %75  ;;  %v61_v48 = vmul.f32 %v57_v35, %v52_v41  ;;  %v115_v4 = vadd.f32 %v111_v58, %v87_v57 }
  0x9c   :  { %v85_v49 = vmul.f32 %v81_v37, %v76_v31 }
  0x9e   :  { %v89_v55 = vadd.f32 %v85_v49, %v61_v48  ;;  %v153_v60 = vpop.permute.xlu0 %152  ;;  %v308_v49 = vld [vmem:[%s660_s5] sm:$0x1] }
  0x9f   :  { %v170_v5 = vadd.f32 %v153_v60, %v142_v63 }
  0xa0   :  { %v124_v36 = vpop.permute.xlu1 %123  ;;  %v117_v0 = vadd.f32 %v113_v54, %v89_v55 }
  0xa1   :  { %v139_v61 = vmul.f32 %v137_v45, %v124_v36  ;;  %483 = vtanh.f32 %v170_v5 }
  0xa2   :  { %v168_v11 = vpop.permute.xlu0 %167 }
  0xa3   :  { %v143_v9 = vadd.f32 %v139_v61, %v115_v4 }
  0xa5   :  { %v100_v44 = vpop.permute.xlu1 %99 }
  0xa6   :  { %v112_v3 = vmul.f32 %v109_v43, %v100_v44  ;;  %v194_v31 = vpop.permute.xlu0 %193 }
  0xa8   :  { %v116_v12 = vadd.f32 %v112_v3, %v88_v7 }
  0xaa   :  { %v128_v52 = vpop.permute.xlu1 %127  ;;  %v204_v37 = vpop.permute.xlu0 %203 }
  0xab   :  { %v140_v8 = vmul.f32 %v137_v45, %v128_v52  ;;  %v484_v18 = vpop.eup %483 }
  0xad   :  { %v144_v15 = vadd.f32 %v140_v8, %v116_v12 }
  0xae   :  { %v132_v62 = vpop.permute.xlu1 %131 }
  0xaf   :  { %v141_v1 = vmul.f32 %v137_v45, %v132_v62 }
  0xb1   :  { %v145_v6 = vadd.f32 %v141_v1, %v117_v0 }
  0xb3   :  { %v158_v10 = vpop.permute.xlu1 %157  ;;  %v173_v14 = vadd.f32 %v168_v11, %v145_v6 }
  0xb4   :  { %v171_v13 = vadd.f32 %v158_v10, %v143_v9 }
  0xb6   :  { %485 = vtanh.f32 %v171_v13 }
  0xb7   :  { %v163_v16 = vpop.permute.xlu1 %162  ;;  %487 = vtanh.f32 %v173_v14 }
  0xb8   :  { %v172_v17 = vadd.f32 %v163_v16, %v144_v15 }
  0xba   :  { %489 = vtanh.f32 %v172_v17 }
  0xbb   :  { %v189_v32 = vpop.permute.xlu1 %188 }
  0xbf   :  { %v199_v39 = vpop.permute.xlu1 %198 }
  0xc0   :  { %v486_v19 = vpop.eup %485 }
  0xc1   :  { %v450_v20 = vpack.c.bf16 %v486_v19, %v484_v18  ;;  %v488_v21 = vpop.eup %487 }
  0xc3   :  { %451 = vmatprep.subr.bf16.mxu0 %v450_v20  ;;  %v313_v50 = vpop.permute.xlu1 %312 }
  0xc4   :  { %v490_v22 = vpop.eup %489  ;;  %453 = vmatpush3.bf16.msra.mxu0 %v450_v20  ;;  %v318_v51 = vrot.slane %v313_v50, %v56_v30 }
  0xc5   :  { %v454_v23 = vpack.c.bf16 %v488_v21, %v490_v22 }
  0xc7   :  { %455 = vmatprep.subr.bf16.mxu0 %v454_v23 }
  0xc8   :  { %457 = vmatpush3.bf16.msra.mxu0 %v454_v23 }
  0xcb   :  { %434 = vmatmul.mubr.msk.f32.vlgmr.msra.gmra.mrb[0].mxu0 %vm206_vm0, %v179_v24 }
  0xcc   :  { %436 = vmatprep.mubr.msk.f32.mxu0 %vm206_vm0, %v180_v25 }
  0xcf   :  { %437 = vmatmul.mubr.msk.f32.gmra.mrb[2].mxu0 %vm206_vm0, %v181_v26 }
 0x19e   :  { %v435_v33 = vpop.f32.mrb[0].mxu0 }
 0x19f   :  { %v291_v34 = vadd.f32 %v435_v33, %v194_v31  ;;  %v285_v35 = vpop.f32.mrb[1].mxu0 }
 0x1a0   :  { %v286_v36 = vadd.f32 %v285_v35, %v189_v32 }
 0x1a1   :  { %491 = vtanh.f32 %v291_v34 }
 0x1a2   :  { %493 = vtanh.f32 %v286_v36  ;;  %v438_v38 = vpop.f32.mrb[2].mxu0 }
 0x1a3   :  { %v301_v40 = vadd.f32 %v438_v38, %v204_v37  ;;  %v295_v41 = vpop.f32.mrb[3].mxu0 }
 0x1a4   :  { %v296_v42 = vadd.f32 %v295_v41, %v199_v39 }
 0x1a5   :  { %495 = vtanh.f32 %v301_v40 }
 0x1a6   :  { %497 = vtanh.f32 %v296_v42 }
 0x1ab   :  { %v492_v43 = vpop.eup %491 }
 0x1ac   :  { %v494_v44 = vpop.eup %493 }
 0x1ad   :  { %v459_v45 = vpack.c.bf16 %v492_v43, %v494_v44 }
 0x1af   :  { %v496_v46 = vpop.eup %495  ;;  %460 = vmatpush3.bf16.msra.mxu1 %v459_v45 }
 0x1b0   :  { %v498_v47 = vpop.eup %497  ;;  %461 = vmatprep.subr.bf16.mxu1 %v527_v27 }
 0x1b1   :  { %v462_v48 = vpack.c.bf16 %v496_v46, %v498_v47 }
 0x1b3   :  { %463 = vmatpush3.bf16.msra.mxu1 %v462_v48 }
 0x1b6   :  { %448 = vmatmul.mubr.msk.f32.vlgmr.msra.gmra.mrb[0].mxu1 %vm206_vm0, %v308_v49 }
 0x289   :  { %v388_v52 = vpop.f32.mrb[0].mxu1 }
 0x28a   :  { %v389_v53 = vadd.f32 %v388_v52, %v318_v51  ;;  %v449_v54 = vpop.f32.mrb[1].mxu1 }
 0x28c   :  { %392 = vst [vmem:[#allocation3] sm:$0x1] %v389_v53 }
 0x28d   :  { %510 = shalt.err (!%p507_p4)
}
 0x28e   :  { %s511_s1 = scalar_lea.hbm %s662_s7, 16 }
 0x28f   :  { %p512_p5 = scmp.ne.s32.totalorder %s662_s7, %s511_s1  ;;  %p515_p6 = scmp.lt.u32.totalorder %s511_s1, %s662_s7 }
 0x291   :  { %p517_p7 = pnand %p515_p6, %p512_p5 }
 0x293   :  { %520 = shalt.err (!%p517_p7)
}
 0x294   :  { %402 = dma.vmem_to_hbm [thread:$0]  %s400_s10, 16, %s662_s7, [#allocation4]  }
 0x295   :  { %521 = dma.done.wait [#allocation4], 16  }
 0x296   :  { %522 = vsyncadd [#allocation4], 4294967280 }
 0x297   :  { %406 = vsyncpa [#allocation4], 1 }

</bundles_post_ra>
